<compile_context>
chip_gen: v6e
topology: v6e:2x2x1
jax: 0.10.0
libtpu: 0.0.40
codegen_flags: <defaults>
</compile_context>

<pallas_src>
import random

import jax
import jax.numpy as jnp
from jax.experimental import pallas as pl
from jax.experimental.pallas import tpu as pltpu


# ----------------------------- Pallas kernel ------------------------------- #
def _symmetry_loss_kernel(alpha_ref, y_ref, g0_ref, gr_ref, logits_ref, out_ref):
    # alpha_ref:  SMEM (1,)   float32
    # y_ref:      VMEM (B,1)  int32 labels
    # g0_ref:     VMEM (B,F)
    # gr_ref:     VMEM (B,F)
    # logits_ref: VMEM (B,NC)
    # out_ref:    SMEM (2,)   float32 -> [total_loss, xloss_mean]
    g0 = g0_ref[...].astype(jnp.float32)                       # (B, F)
    gr = gr_ref[...].astype(jnp.float32)                       # (B, F)
    B = g0.shape[0]

    # Three direct lane reductions (no stack: concat would materialize an
    # extra (3,B,F) copy and the slices back out aren't views).
    dot = jnp.sum(g0 * gr, axis=-1, keepdims=True)             # (B, 1)
    n0sq = jnp.sum(g0 * g0, axis=-1, keepdims=True)            # (B, 1)
    n1sq = jnp.sum(gr * gr, axis=-1, keepdims=True)            # (B, 1)

    # torch CosineSimilarity(dim=-1): dot / max(||g0||*||gr||, 1e-8)
    #   == dot * rsqrt(max(n0sq * n1sq, 1e-16))   (single EUP rsqrt)
    cos = dot * jax.lax.rsqrt(jnp.maximum(n0sq * n1sq, 1e-16))
    xloss = 1.0 - jnp.abs(cos)                                 # (B, 1)
    xmean = jnp.sum(xloss, keepdims=True) / B                  # (1, 1)

    # Row-wise log-softmax + vectorized one-hot gather -> cross-entropy.
    logits = logits_ref[...].astype(jnp.float32)               # (B, NC)
    NC = logits.shape[-1]
    m = jnp.max(logits, axis=-1, keepdims=True)
    z = logits - m
    logp = z - jnp.log(jnp.sum(jnp.exp(z), axis=-1, keepdims=True))

    class_iota = jax.lax.broadcasted_iota(jnp.int32, (B, NC), 1)
    mask = class_iota == y_ref[...]                            # (B,NC) via (B,1) bcast
    ce = -jnp.sum(jnp.where(mask, logp, 0.0), keepdims=True) / B   # (1, 1)

    alpha = alpha_ref[0]                                       # SMEM scalar
    total = ce + alpha * xmean                                 # (1, 1)

    out_ref[0] = total[0, 0]
    out_ref[1] = xmean[0, 0]


def symmetry_constraint_loss(grad0, grad_rot, outputs, y, alpha_arr):
    """Returns (total_loss, xloss_mean), both scalars."""
    B, F = grad0.shape
    _, NC = outputs.shape
    grid_spec = pltpu.PrefetchScalarGridSpec(
        num_scalar_prefetch=0,
        grid=(1,),
        in_specs=[
            pl.BlockSpec(memory_space=pltpu.MemorySpace.SMEM),   # alpha (1,)
            pl.BlockSpec((B, 1), lambda i: (0, 0)),              # labels (B,1)
            pl.BlockSpec((B, F), lambda i: (0, 0)),              # grad0
            pl.BlockSpec((B, F), lambda i: (0, 0)),              # grad_rot
            pl.BlockSpec((B, NC), lambda i: (0, 0)),             # logits
        ],
        out_specs=pl.BlockSpec(memory_space=pltpu.MemorySpace.SMEM),
    )
    out = pl.pallas_call(
        _symmetry_loss_kernel,
        out_shape=jax.ShapeDtypeStruct((2,), jnp.float32),
        grid_spec=grid_spec,
        compiler_params=pltpu.CompilerParams(
            dimension_semantics=("arbitrary",)),
    )(alpha_arr, y[:, None].astype(jnp.int32), grad0, grad_rot, outputs)
    return out[0], out[1]


# ------------------------------ JAX glue ----------------------------------- #
def rotate_nearest(img, angle_deg):
    """Nearest-neighbor rotation about the image center (NCHW), like
    torchvision.transforms.functional.rotate with default interpolation."""
    # TODO(synk): gather-based image rotation has no clean Pallas equivalent;
    # done in plain JAX glue (runs inside the same jit).
    _, _, H, W = img.shape
    theta = jnp.deg2rad(jnp.asarray(angle_deg, jnp.float32))
    cy, cx = (H - 1) / 2.0, (W - 1) / 2.0
    yy, xx = jnp.meshgrid(jnp.arange(H, dtype=jnp.float32),
                          jnp.arange(W, dtype=jnp.float32), indexing="ij")
    y0, x0 = yy - cy, xx - cx
    ct, st = jnp.cos(theta), jnp.sin(theta)
    src_x = ct * x0 + st * y0 + cx     # inverse map of a CCW rotation
    src_y = -st * x0 + ct * y0 + cy
    sx = jnp.round(src_x).astype(jnp.int32)
    sy = jnp.round(src_y).astype(jnp.int32)
    valid = (sx >= 0) & (sx < W) & (sy >= 0) & (sy < H)
    sxc = jnp.clip(sx, 0, W - 1)
    syc = jnp.clip(sy, 0, H - 1)
    gathered = img[:, :, syc, sxc]
    return jnp.where(valid[None, None], gathered, 0.0)


def linear_model(params, x):
    """Synthetic stand-in for `model`: flatten NCHW -> linear classifier."""
    B = x.shape[0]
    return x.reshape(B, -1) @ params["W"] + params["b"]


def _ce_loss(logits, y):
    logp = jax.nn.log_softmax(logits, axis=-1)
    return -jnp.sum(jnp.take_along_axis(logp, y[:, None], axis=1)) / y.shape[0]


def input_grads(params, x, y):
    """Stand-in for `input_grads(outputs0, x_rot, y)`: d CE(model(x), y) / dx."""
    return jax.grad(lambda xx: _ce_loss(linear_model(params, xx), y))(x)


@jax.jit
def _forward_step(params, outputs, grad, x, y, angle, alpha_arr):
    """Whole per-step path under one jit: rotation, model grad, Pallas kernel."""
    x_rot = rotate_nearest(x, angle)
    _outputs0 = linear_model(params, x_rot)   # computed (and unused), as in torch
    grad0 = input_grads(params, x_rot, y)
    grad_rot = rotate_nearest(grad, angle)
    B = grad_rot.shape[0]
    hw = grad_rot.shape[-1] ** 2
    grad_rot = jnp.squeeze(grad_rot).reshape(B, hw)
    grad0 = jnp.squeeze(grad0).reshape(B, hw)
    return symmetry_constraint_loss(grad0, grad_rot, outputs, y, alpha_arr)


class SymmetryConstraint:
    def __init__(self, cweight=1.0):
        self.alpha = cweight
        self._alpha_arr = jnp.asarray([cweight], jnp.float32)

    def forward(self, outputs, grad, x, model_params, y, xl):
        angle = random.choice([5, 10, 15, 20])
        total, xmean = _forward_step(model_params, outputs, grad, x, y,
                                     jnp.float32(angle), self._alpha_arr)
        # Mirrors xl.append(xloss.mean().item()) but without forcing a host
        # sync every step; convert with float() whenever actually needed.
        xl.append(xmean)
        return total


# -------------------------------- main -------------------------------------- #
if __name__ == "__main__":
    random.seed(0)
    key = jax.random.PRNGKey(0)
    B, C, H, W, NC = 2, 1, 16, 16, 10
    k1, k2, k3, k4, k5 = jax.random.split(key, 5)

    x = jax.random.normal(k1, (B, C, H, W), jnp.float32)
    grad = jax.random.normal(k2, (B, C, H, W), jnp.float32)
    y = jax.random.randint(k3, (B,), 0, NC, dtype=jnp.int32)
    outputs = jax.random.normal(k4, (B, NC), jnp.float32)
    params = {
        "W": 0.05 * jax.random.normal(k5, (C * H * W, NC), jnp.float32),
        "b": jnp.zeros((NC,), jnp.float32),
    }

    xl = []
    mod = SymmetryConstraint(cweight=1.0)
    loss = mod.forward(outputs, grad, x, params, y, xl)
    jax.block_until_ready(loss)
    jax.block_until_ready(xl[0])
    print("KERNEL_OK")
</pallas_src>

<mosaic_0001>
module attributes {stable_mosaic.version = 11 : i64} {
  func.func @_symmetry_loss_kernel(%arg0: i32, %arg1: memref<1xf32, #tpu.memory_space<smem>>, %arg2: memref<2x1xi32, #tpu.memory_space<vmem>>, %arg3: memref<2x256xf32, #tpu.memory_space<vmem>>, %arg4: memref<2x256xf32, #tpu.memory_space<vmem>>, %arg5: memref<2x10xf32, #tpu.memory_space<vmem>>, %arg6: memref<2xf32, #tpu.memory_space<smem>>) attributes {dimension_semantics = [#tpu.dimension_semantics<arbitrary>], iteration_bounds = array<i64: 1>, scalar_prefetch = 0 : i64, scratch_operands = 0 : i64, tpu.core_type = #tpu.core_type<tc>, window_params = [{transform_indices = @transform_0, window_bounds = array<i64: 1>}, {pipeline_mode = #tpu.pipeline_mode<synchronous>, transform_indices = @transform_1, window_bounds = array<i64: 2, 1>}, {pipeline_mode = #tpu.pipeline_mode<synchronous>, transform_indices = @transform_2, window_bounds = array<i64: 2, 256>}, {pipeline_mode = #tpu.pipeline_mode<synchronous>, transform_indices = @transform_3, window_bounds = array<i64: 2, 256>}, {pipeline_mode = #tpu.pipeline_mode<synchronous>, transform_indices = @transform_4, window_bounds = array<i64: 2, 10>}, {transform_indices = @transform_5, window_bounds = array<i64: 2>}]} {
    %c0 = arith.constant 0 : index
    %c0_0 = arith.constant 0 : index
    %0 = vector.load %arg3[%c0, %c0_0] : memref<2x256xf32, #tpu.memory_space<vmem>>, vector<2x256xf32>
    %c0_1 = arith.constant 0 : index
    %c0_2 = arith.constant 0 : index
    %1 = vector.load %arg4[%c0_1, %c0_2] : memref<2x256xf32, #tpu.memory_space<vmem>>, vector<2x256xf32>
    %2 = arith.mulf %0, %1 : vector<2x256xf32>
    %cst = arith.constant dense<0.000000e+00> : vector<2xf32>
    %3 = vector.multi_reduction <add>, %2, %cst [1] : vector<2x256xf32> to vector<2xf32>
    %4 = vector.shape_cast %3 : vector<2xf32> to vector<2x1xf32>
    %5 = arith.mulf %0, %0 : vector<2x256xf32>
    %cst_3 = arith.constant dense<0.000000e+00> : vector<2xf32>
    %6 = vector.multi_reduction <add>, %5, %cst_3 [1] : vector<2x256xf32> to vector<2xf32>
    %7 = vector.shape_cast %6 : vector<2xf32> to vector<2x1xf32>
    %8 = arith.mulf %1, %1 : vector<2x256xf32>
    %cst_4 = arith.constant dense<0.000000e+00> : vector<2xf32>
    %9 = vector.multi_reduction <add>, %8, %cst_4 [1] : vector<2x256xf32> to vector<2xf32>
    %10 = vector.shape_cast %9 : vector<2xf32> to vector<2x1xf32>
    %11 = arith.mulf %7, %10 : vector<2x1xf32>
    %cst_5 = arith.constant 1.000000e-16 : f32
    %12 = vector.broadcast %cst_5 : f32 to vector<2x1xf32>
    %13 = arith.maximumf %11, %12 : vector<2x1xf32>
    %14 = math.rsqrt %13 : vector<2x1xf32>
    %15 = arith.mulf %4, %14 : vector<2x1xf32>
    %16 = math.absf %15 : vector<2x1xf32>
    %cst_6 = arith.constant 1.000000e+00 : f32
    %17 = vector.broadcast %cst_6 : f32 to vector<2x1xf32>
    %18 = arith.subf %17, %16 : vector<2x1xf32>
    %19 = vector.shape_cast %18 : vector<2x1xf32> to vector<1x2x1xf32>
    %cst_7 = arith.constant dense<0.000000e+00> : vector<1xf32>
    %20 = vector.multi_reduction <add>, %19, %cst_7 [1, 2] : vector<1x2x1xf32> to vector<1xf32>
    %21 = vector.shape_cast %20 : vector<1xf32> to vector<1x1x1xf32>
    %22 = vector.extract %21[0, 0, 0] : f32 from vector<1x1x1xf32>
    %23 = vector.broadcast %22 : f32 to vector<1x1xf32>
    %cst_8 = arith.constant 2.000000e+00 : f32
    %24 = vector.broadcast %cst_8 : f32 to vector<1x1xf32>
    %25 = arith.divf %23, %24 : vector<1x1xf32>
    %c0_9 = arith.constant 0 : index
    %c0_10 = arith.constant 0 : index
    %26 = vector.load %arg5[%c0_9, %c0_10] : memref<2x10xf32, #tpu.memory_space<vmem>>, vector<2x10xf32>
    %cst_11 = arith.constant dense<0xFF800000> : vector<2xf32>
    %27 = vector.multi_reduction <maximumf>, %26, %cst_11 [1] : vector<2x10xf32> to vector<2xf32>
    %28 = vector.shape_cast %27 : vector<2xf32> to vector<2x1xf32>
    %29 = vector.broadcast %28 : vector<2x1xf32> to vector<2x10xf32>
    %30 = arith.subf %26, %29 : vector<2x10xf32>
    %31 = math.exp %30 : vector<2x10xf32>
    %cst_12 = arith.constant dense<0.000000e+00> : vector<2xf32>
    %32 = vector.multi_reduction <add>, %31, %cst_12 [1] : vector<2x10xf32> to vector<2xf32>
    %33 = vector.shape_cast %32 : vector<2xf32> to vector<2x1xf32>
    %34 = math.log %33 : vector<2x1xf32>
    %35 = vector.broadcast %34 : vector<2x1xf32> to vector<2x10xf32>
    %36 = arith.subf %30, %35 : vector<2x10xf32>
    %37 = tpu.iota {dimensions = array<i32: 1>} : vector<2x10xi32>
    %c0_13 = arith.constant 0 : index
    %c0_14 = arith.constant 0 : index
    %38 = vector.load %arg2[%c0_13, %c0_14] : memref<2x1xi32, #tpu.memory_space<vmem>>, vector<2x1xi32>
    %39 = vector.broadcast %38 : vector<2x1xi32> to vector<2x10xi32>
    %40 = arith.cmpi eq, %37, %39 : vector<2x10xi32>
    %cst_15 = arith.constant 0.000000e+00 : f32
    %41 = vector.broadcast %cst_15 : f32 to vector<2x10xf32>
    %42 = arith.select %40, %36, %41 : vector<2x10xi1>, vector<2x10xf32>
    %43 = vector.shape_cast %42 : vector<2x10xf32> to vector<1x2x10xf32>
    %cst_16 = arith.constant dense<0.000000e+00> : vector<1xf32>
    %44 = vector.multi_reduction <add>, %43, %cst_16 [1, 2] : vector<1x2x10xf32> to vector<1xf32>
    %45 = vector.shape_cast %44 : vector<1xf32> to vector<1x1x1xf32>
    %46 = vector.extract %45[0, 0, 0] : f32 from vector<1x1x1xf32>
    %47 = vector.broadcast %46 : f32 to vector<1x1xf32>
    %cst_17 = arith.constant 0.000000e+00 : f32
    %48 = vector.broadcast %cst_17 : f32 to vector<1x1xf32>
    %49 = arith.subf %48, %47 : vector<1x1xf32>
    %cst_18 = arith.constant 2.000000e+00 : f32
    %50 = vector.broadcast %cst_18 : f32 to vector<1x1xf32>
    %51 = arith.divf %49, %50 : vector<1x1xf32>
    %c0_19 = arith.constant 0 : index
    %52 = memref.load %arg1[%c0_19] : memref<1xf32, #tpu.memory_space<smem>>
    %53 = vector.broadcast %52 : f32 to vector<1x1xf32>
    %54 = arith.mulf %53, %25 : vector<1x1xf32>
    %55 = arith.addf %51, %54 : vector<1x1xf32>
    %56 = vector.extract %55[0, 0] : f32 from vector<1x1xf32>
    %c0_20 = arith.constant 0 : index
    %57 = memref.load %arg6[%c0_20] : memref<2xf32, #tpu.memory_space<smem>>
    memref.store %56, %arg6[%c0_20] : memref<2xf32, #tpu.memory_space<smem>>
    %58 = vector.extract %25[0, 0] : f32 from vector<1x1xf32>
    %c1 = arith.constant 1 : index
    %59 = memref.load %arg6[%c1] : memref<2xf32, #tpu.memory_space<smem>>
    memref.store %58, %arg6[%c1] : memref<2xf32, #tpu.memory_space<smem>>
    return
  }
  func.func @transform_0(%arg0: i32) -> i32 {
    %c0_i32 = arith.constant 0 : i32
    %c0_i32_0 = arith.constant 0 : i32
    return %c0_i32 : i32
  }
  func.func @transform_1(%arg0: i32) -> (i32, i32) {
    %c0_i32 = arith.constant 0 : i32
    %c0_i32_0 = arith.constant 0 : i32
    %c0_i32_1 = arith.constant 0 : i32
    return %c0_i32, %c0_i32_0 : i32, i32
  }
  func.func @transform_2(%arg0: i32) -> (i32, i32) {
    %c0_i32 = arith.constant 0 : i32
    %c0_i32_0 = arith.constant 0 : i32
    %c0_i32_1 = arith.constant 0 : i32
    return %c0_i32, %c0_i32_0 : i32, i32
  }
  func.func @transform_3(%arg0: i32) -> (i32, i32) {
    %c0_i32 = arith.constant 0 : i32
    %c0_i32_0 = arith.constant 0 : i32
    %c0_i32_1 = arith.constant 0 : i32
    return %c0_i32, %c0_i32_0 : i32, i32
  }
  func.func @transform_4(%arg0: i32) -> (i32, i32) {
    %c0_i32 = arith.constant 0 : i32
    %c0_i32_0 = arith.constant 0 : i32
    %c0_i32_1 = arith.constant 0 : i32
    return %c0_i32, %c0_i32_0 : i32, i32
  }
  func.func @transform_5(%arg0: i32) -> i32 {
    %c0_i32 = arith.constant 0 : i32
    %c0_i32_0 = arith.constant 0 : i32
    return %c0_i32 : i32
  }
}

</mosaic_0001>

<bundles_post_ra>
// kernel: _forward_step.1
= control target key start
LH: loop header
LB: loop body
LE: loop exit
PB: predicated region body
PF: predicated region fallthrough
CT: control target
= control target key end

     0   :  { %vm97_vm0 = vcmask 74752   ;;  %s243_s0 = inlined_call_operand.<no memory space> [shape: f32[1], index: 0, kind: input, shape index: {}]   ;;  %s244_s1 = inlined_call_operand.vmem [shape: s32[2,1], index: 1, kind: input, shape index: {}]   ;;  %s245_s2 = inlined_call_operand.vmem [shape: f32[2,256], index: 2, kind: input, shape index: {}]   ;;  %s246_s3 = inlined_call_operand.vmem [shape: f32[2,256], index: 3, kind: input, shape index: {}]   ;;  %s247_s4 = inlined_call_operand.vmem [shape: f32[2,10], index: 4, kind: input, shape index: {}]   ;;  %s248_s5 = inlined_call_operand.vmem [shape: f32[2], index: 5, kind: output, shape index: {}]  }
   0x1   :  { %v96_v0 = vld [vmem:[%s247_s4] sm:$0x3] }
   0x2   :  { %11 = vsyncpa [#allocation4], 0  ;;  %v98_v1 = vsel %vm97_vm0, %v96_v0, -inf  ;;  %v189_v2 = vmov 1983009808   ;;  %v29_v4 = vlaneseq  ;;  %vm36_vm1 = vcmask 1041408  }
   0x3   :  { %99 = vmax.xlane.f32.xlu0 %v98_v1  ;;  %v27_v3 = vunpack.c.l.s4 %v189_v2  ;;  %v23_v7 = vld [vmem:[%s246_s3] sm:$0xf]  ;;  %v190_v28 = vmov 0   ;;  %vm82_vm2 = vcmask 1024   ;;  %s147_s28 = sshll.u32 %s248_s5, 4  ;;  %s148_s28 = int_to_ptr.vmem [resolvable:$true] %s147_s28 }
   0x4   :  { %v30_v6 = vshrl.u32 %v29_v4, 7  ;;  %v22_v8 = vld [vmem:[%s245_s2] sm:$0xf]  ;;  %v59_v10 = vmul.f32 %v23_v7, %v23_v7  ;;  %167 = vset.pattern.permute.xlu1 %v190_v28  ;;  %168 = vset.pattern.permute.xlu0 %v190_v28  ;;  %v111_v46 = vand.u32 127, %v29_v4  ;;  %s175_s6 = scalar_lea.vmem %s148_s28, 16  ;;  %p180_p1 = scmp.lt.s32.totalorder %s148_s28, %s148_s28 }
   0x5   :  { %v28_v5 = vunpack.c.0.s8 %v27_v3  ;;  %v42_v11 = vmul.f32 %v22_v8, %v22_v8  ;;  %v24_v22 = vmul.f32 %v23_v7, %v22_v8  ;;  %v112_v41 = vld [vmem:[%s244_s1] sm:$0x3]  ;;  %p176_p0 = scmp.ne.s32.totalorder %s148_s28, %s175_s6  ;;  %p181_p2 = scmp.lt.s32.totalorder %s175_s6, %s175_s6 }
   0x7   :  { %v31_v9 = vsub.s32 %v28_v5, %v30_v6  ;;  %v132_v5 = vstv %s243_s0  ;;  %p182_p3 = por %p181_p2, %p180_p1 }
   0x9   :  { %v67_v12 = vrot.slane %v59_v10, %v31_v9  ;;  %v50_v13 = vrot.slane %v42_v11, %v31_v9  ;;  %v32_v23 = vrot.slane %v24_v22, %v31_v9  ;;  %p183_p4 = pnand %p182_p3, %p176_p0 }
   0xb   :  { %v68_v14 = vcombine.high %v67_v12, %v67_v12  ;;  %v51_v15 = vcombine.high %v50_v13, %v50_v13  ;;  %v71_v16 = vsel %vm36_vm1, %v67_v12, 0.0  ;;  %v54_v18 = vsel %vm36_vm1, %v50_v13, 0.0 }
   0xc   :  { %v33_v24 = vcombine.high %v32_v23, %v32_v23  ;;  %v37_v25 = vsel %vm36_vm1, %v32_v23, 0.0 }
   0xd   :  { %v72_v17 = vsel %vm36_vm1, %v68_v14, 0.0  ;;  %v55_v19 = vsel %vm36_vm1, %v51_v15, 0.0 }
   0xe   :  { %v73_v20 = vadd.f32 %v72_v17, %v71_v16  ;;  %v56_v21 = vadd.f32 %v55_v19, %v54_v18  ;;  %v38_v26 = vsel %vm36_vm1, %v33_v24, 0.0 }
   0xf   :  { %v39_v27 = vadd.f32 %v38_v26, %v37_v25 }
  0x10   :  { %74 = vadd.xlane.f32.xlu1 %v73_v20  ;;  %57 = vadd.xlane.f32.xlu0 %v56_v21 }
  0x14   :  { %40 = vadd.xlane.f32.xlu0 %v39_v27 }
  0x8c   :  { %v100_v29 = vpop.xlane.xlu0 %99 }
  0x8d   :  { %v101_v30 = vsub.f32 %v96_v0, %v100_v29 }
  0x8f   :  { %v102_v31 = vmul.f32 1.442695, %v101_v30 }
  0x91   :  { %169 = vpow2.f32 %v102_v31 }
  0x99   :  { %v75_v32 = vpop.xlane.xlu1 %74  ;;  %v58_v33 = vpop.xlane.xlu0 %57 }
  0x9a   :  { %v76_v34 = vmul.f32 %v75_v32, %v58_v33 }
  0x9c   :  { %v77_v35 = vmax.f32 %v76_v34, 1e-16 }
  0x9d   :  { %v41_v39 = vpop.xlane.xlu0 %40 }
  0x9e   :  { %v170_v36 = vpop.eup %169  ;;  %171 = vrsqrt.f32 %v77_v35 }
  0x9f   :  { %v104_v37 = vsel %vm97_vm0, %v170_v36, 0.0 }
  0xa0   :  { %105 = vadd.xlane.f32.xlu1 %v104_v37 }
  0xab   :  { %v172_v38 = vpop.eup %171 }
  0xac   :  { %v79_v40 = vmul.f32 %v172_v38, %v41_v39 }
  0xae   :  { %v80_v42 = vand.u32 2147483647, %v79_v40 }
  0xb0   :  { %v81_v43 = vsub.f32 1.0, %v80_v42 }
  0xb1   :  { %114 = vperm.xlu1 %167, %v112_v41  }
  0xb2   :  { %v83_v44 = vsel %vm82_vm2, %v81_v43, 0.0 }
  0xb3   :  { %84 = vadd.xlane.f32.xlu0 %v83_v44 }
 0x129   :  { %v106_v45 = vpop.xlane.xlu1 %105 }
 0x12a   :  { %173 = vlog2.f32 %v106_v45 }
 0x12d   :  { %v115_v47 = vpop.permute.xlu1 %114 }
 0x12e   :  { %vm116_vm3 = vcmp.eq.s32.totalorder %v111_v46, %v115_v47 }
 0x137   :  { %v174_v48 = vpop.eup %173 }
 0x138   :  { %v108_v49 = vmul.f32 0.6931472, %v174_v48 }
 0x13a   :  { %v109_v50 = vsub.f32 %v101_v30, %v108_v49 }
 0x13c   :  { %v117_v51 = vsel %vm116_vm3, %v109_v50, 0.0  ;;  %v85_v53 = vpop.xlane.xlu0 %84 }
 0x13d   :  { %v118_v52 = vsel %vm97_vm0, %v117_v51, 0.0  ;;  %v86_v54 = vrot.slane %v85_v53, 4 }
 0x13e   :  { %119 = vadd.xlane.f32.xlu0 %v118_v52 }
 0x13f   :  { %v87_v55 = vadd.f32 %v86_v54, %v85_v53 }
 0x141   :  { %v88_v56 = vrot.slane %v87_v55, 2 }
 0x143   :  { %v89_v57 = vadd.f32 %v88_v56, %v87_v55 }
 0x145   :  { %v90_v58 = vrot.slane %v89_v57, 1 }
 0x147   :  { %v91_v59 = vadd.f32 %v90_v58, %v89_v57 }
 0x149   :  { %156 = vpush %v91_v59 }
 0x17a   :  { %s157_s1 = spop %156 }
 0x17b   :  { %v93_v3 = vstv %s157_s1 }
 0x17c   :  { %v95_v4 = vmul.f32 0.5, %v93_v3 }
 0x17e   :  { %v133_v8 = vmul.f32 %v132_v5, %v95_v4 }
 0x1c7   :  { %v120_v60 = vpop.xlane.xlu0 %119 }
 0x1c8   :  { %v121_v61 = vrot.slane %v120_v60, 4 }
 0x1ca   :  { %v122_v62 = vadd.f32 %v121_v61, %v120_v60 }
 0x1cc   :  { %v123_v63 = vrot.slane %v122_v62, 2 }
 0x1ce   :  { %v124_v0 = vadd.f32 %v123_v63, %v122_v62 }
 0x1d0   :  { %v125_v1 = vrot.slane %v124_v0, 1 }
 0x1d2   :  { %v126_v2 = vadd.f32 %v125_v1, %v124_v0 }
 0x1d4   :  { %158 = vpush %v126_v2 }
 0x205   :  { %s159_s4 = spop %158 }
 0x206   :  { %v128_v6 = vstv %s159_s4 }
 0x207   :  { %v129_v7 = vsub.f32 0.0, %v128_v6 }
 0x209   :  { %v130_v9 = vmul.f32 0.5, %v129_v7 }
 0x20b   :  { %v134_v10 = vadd.f32 %v133_v8, %v130_v9 }
 0x20d   :  { %160 = vpush %v134_v10 }
 0x20e   :  { %162 = vpush %v95_v4 }
 0x23e   :  { %s161_s29 = spop %160 }
 0x23f   :  { %137 = sst [smem:[#allocation3]] %s161_s29  ;;  %s163_s30 = spop %162 }
 0x240   :  { %140 = sst [smem:[#allocation3 + $0x1]] %s163_s30 }
 0x241   :  { %186 = shalt.err (!%p183_p4)
}
 0x242   :  { %s191_s0 = smov [#allocation3]  }
 0x243   :  { %150 = dma.smem_to_vmem %s191_s0, 16, %s148_s28, [#allocation4]  }
 0x244   :  { %187 = dma.done.wait [#allocation4], 16  }
 0x245   :  { %188 = vsyncadd [#allocation4], 4294967280 }
 0x246   :  { %154 = sfence }
 0x247   :  { %155 = vsyncpa [#allocation4], 1 }

</bundles_post_ra>
